<compile_context>
chip_gen: v5e
topology: v5e:2x2
jax: 0.10.0
libtpu: 0.0.40
codegen_flags: <defaults>
</compile_context>

<pallas_src>
import functools

import jax
import jax.numpy as jnp
from jax import lax
from jax.experimental import pallas as pl
from jax.experimental.pallas import tpu as pltpu


def _classifier_kernel(x_ref, w_ref, o_ref, *, inv_temp):
    # x_ref: [TB, D] (f32 or bf16), w_ref: [D, Cpad] bf16, o_ref: [TB, Cpad]
    x = x_ref[...]
    xf = x.astype(jnp.float32)

    # Row scale = inv_temp / max(||x||_2, 1e-12).  rsqrt on the squared norm
    # (clamped at eps^2 = 1e-24) matches F.normalize's zero-row behavior and
    # runs on the EUP.  Note: f32 sum(x*x) can overflow only for |x| ~ 1e19,
    # far outside ResNet feature range.
    sq_norm = jnp.sum(xf * xf, axis=1, keepdims=True)            # [TB, 1] f32
    scale = lax.rsqrt(jnp.maximum(sq_norm, 1e-24)) * inv_temp    # [TB, 1] f32

    # MXU matmul on un-normalized x: bf16 inputs, f32 accumulate.
    logits = jnp.dot(x.astype(jnp.bfloat16), w_ref[...],
                     preferred_element_type=jnp.float32)         # [TB, Cpad]

    # Scale touches only B x Cpad elements; store is lane-dense.
    o_ref[...] = (logits * scale).astype(o_ref.dtype)


def prepare_classifier_weight(weight, dtype=jnp.bfloat16):
    """One-time weight prep (do at parameter init, NOT per forward call).

    weight: [C, D] (PyTorch nn.Linear layout).
    Returns [D, Cpad] with the class dim zero-padded to a multiple of 128 and
    cast to bf16 for the MXU.  Padded columns give exactly-zero logits.
    """
    C, D = weight.shape
    c_pad = pl.cdiv(C, 128) * 128
    w_t = jnp.zeros((D, c_pad), dtype=dtype)
    w_t = w_t.at[:, :C].set(weight.T.astype(dtype))
    return w_t


def _choose_batch_tile(B, D, c_pad, x_bytes, out_bytes, vmem_budget_bytes):
    """Largest batch tile (multiple of 8, <= 1024) that fits the VMEM budget.

    Per-row VMEM: x double-buffered + in-kernel bf16 copy of the x tile,
    plus output double-buffered + f32 logits temp.  The bf16 weight is a
    single resident buffer.
    """
    per_row = D * (2 * x_bytes + 2) + c_pad * (2 * out_bytes + 4)
    weight_bytes = D * c_pad * 2
    avail = max(vmem_budget_bytes - weight_bytes, 8 * per_row)
    tb = int(avail // per_row)
    tb = max(8, (tb // 8) * 8)
    tb = min(tb, 1024)
    if B <= tb:
        tb = B
    return tb, weight_bytes + tb * per_row


def resnet_classifier_forward(x, w_prepared, num_classes, temp=0.05,
                              return_feat=False,
                              vmem_budget_bytes=28 << 20,
                              return_padded=False):
    """x: [B, D] (f32 or bf16); w_prepared: [D, Cpad] from prepare_classifier_weight.

    If return_padded=True, skips the out[:, :num_classes] slice (an extra XLA
    copy) and returns [B, Cpad] logits whose padded columns are exact zeros.
    """
    if return_feat:
        return x

    B, D = x.shape
    D_w, c_pad = w_prepared.shape
    assert D == D_w, "feature dim mismatch"
    assert c_pad % 128 == 0

    x_bytes = jnp.dtype(x.dtype).itemsize
    out_bytes = x_bytes
    tb, vmem_est = _choose_batch_tile(B, D, c_pad, x_bytes, out_bytes,
                                      vmem_budget_bytes)

    # Explicit scoped-VMEM limit sized to the buffer estimate (+headroom),
    # floored at 32 MiB and capped at 56 MiB so it fits every generation's
    # physical VMEM (v7x = 64 MiB) while exceeding v5e's 16 MiB scoped default.
    vmem_limit = int(min(max(vmem_est + (vmem_est >> 2) + (4 << 20), 32 << 20),
                         56 << 20))

    kernel = functools.partial(_classifier_kernel, inv_temp=float(1.0 / temp))
    out_shape = jax.ShapeDtypeStruct((B, c_pad), x.dtype)

    def _call(single_buffer_weight):
        if single_buffer_weight:
            # Constant index_map => second weight buffer is dead; reclaim it.
            w_spec = pl.BlockSpec((D, c_pad), lambda i: (0, 0),
                                  pipeline_mode=pl.Buffered(1))
        else:
            w_spec = pl.BlockSpec((D, c_pad), lambda i: (0, 0))
        return pl.pallas_call(
            kernel,
            out_shape=out_shape,
            grid_spec=pltpu.PrefetchScalarGridSpec(
                num_scalar_prefetch=0,
                grid=(pl.cdiv(B, tb),),
                in_specs=[
                    pl.BlockSpec((tb, D), lambda i: (i, 0)),   # x: tiled over B
                    w_spec,                                    # weight resident
                ],
                out_specs=pl.BlockSpec((tb, c_pad), lambda i: (i, 0)),
            ),
            compiler_params=pltpu.CompilerParams(
                dimension_semantics=("parallel",),
                vmem_limit_bytes=vmem_limit,
            ),
        )(x, w_prepared)

    try:
        out = _call(True)
    except Exception:
        # pipeline_mode=pl.Buffered(1) not supported on this build -> default
        # double buffering (only costs ~D*Cpad*2 bytes of VMEM headroom).
        out = _call(False)

    if return_padded:
        return out
    return out[:, :num_classes]


def reference_forward(x, weight, temp=0.05):
    # Pure-JAX f32 reference mirroring the PyTorch code.
    xf = x.astype(jnp.float32)
    norm = jnp.sqrt(jnp.sum(xf * xf, axis=1, keepdims=True))
    x_n = xf / jnp.maximum(norm, 1e-12)
    return (x_n @ weight.T) / temp


if __name__ == "__main__":
    # Small, module-consistent shapes: the classifier takes flat features [B, D].
    batch = 8
    input_size = 256   # stands in for the 2048-d ResNet feature
    num_classes = 31   # default from the module
    temp = 0.05

    key = jax.random.PRNGKey(0)
    kx, kw = jax.random.split(key)

    x = jax.random.normal(kx, (batch, input_size), dtype=jnp.float32)
    # weights_init: normal(mean=0.0, std=0.1), PyTorch Linear layout [C, D]
    weight = 0.1 * jax.random.normal(kw, (num_classes, input_size),
                                     dtype=jnp.float32)

    # One-time weight preparation (pad to lane-dense Cpad, transpose, bf16).
    w_prepared = prepare_classifier_weight(weight)

    out = resnet_classifier_forward(x, w_prepared, num_classes, temp=temp)
    out = jax.block_until_ready(out)

    ref = reference_forward(x, weight, temp=temp)
    assert out.shape == (batch, num_classes)
    # bf16 MXU feed => small numeric drift vs the f32 reference.
    assert jnp.allclose(out, ref, atol=5e-2, rtol=5e-2), "mismatch vs reference"

    print("KERNEL_OK")
</pallas_src>

<mosaic_0001>
module attributes {stable_mosaic.version = 11 : i64} {
  func.func @_classifier_kernel(%arg0: i32, %arg1: memref<8x256xf32, #tpu.memory_space<vmem>>, %arg2: memref<256x128xbf16, #tpu.memory_space<vmem>>, %arg3: memref<8x128xf32, #tpu.memory_space<vmem>>) attributes {dimension_semantics = [#tpu.dimension_semantics<parallel>], iteration_bounds = array<i64: 1>, scalar_prefetch = 0 : i64, scratch_operands = 0 : i64, tpu.core_type = #tpu.core_type<tc>, window_params = [{transform_indices = @transform_0, window_bounds = array<i64: 8, 256>}, {pipeline_mode = #tpu.pipeline_mode<synchronous>, transform_indices = @transform_1, window_bounds = array<i64: 256, 128>}, {transform_indices = @transform_2, window_bounds = array<i64: 8, 128>}]} {
    %c0 = arith.constant 0 : index
    %c0_0 = arith.constant 0 : index
    %0 = vector.load %arg1[%c0, %c0_0] : memref<8x256xf32, #tpu.memory_space<vmem>>, vector<8x256xf32>
    %1 = arith.mulf %0, %0 : vector<8x256xf32>
    %cst = arith.constant dense<0.000000e+00> : vector<8xf32>
    %2 = vector.multi_reduction <add>, %1, %cst [1] : vector<8x256xf32> to vector<8xf32>
    %3 = vector.shape_cast %2 : vector<8xf32> to vector<8x1xf32>
    %cst_1 = arith.constant 1.000000e-24 : f32
    %4 = vector.broadcast %cst_1 : f32 to vector<8x1xf32>
    %5 = arith.maximumf %3, %4 : vector<8x1xf32>
    %6 = math.rsqrt %5 : vector<8x1xf32>
    %cst_2 = arith.constant 2.000000e+01 : f32
    %7 = vector.broadcast %cst_2 : f32 to vector<8x1xf32>
    %8 = arith.mulf %6, %7 : vector<8x1xf32>
    %9 = arith.truncf %0 : vector<8x256xf32> to vector<8x256xbf16>
    %c0_3 = arith.constant 0 : index
    %c0_4 = arith.constant 0 : index
    %10 = vector.load %arg2[%c0_3, %c0_4] : memref<256x128xbf16, #tpu.memory_space<vmem>>, vector<256x128xbf16>
    %cst_5 = arith.constant dense<0.000000e+00> : vector<8x128xf32>
    %11 = tpu.matmul %9, %10, %cst_5 {dimension_numbers = #tpu.dot_dimension_numbers<[1], [0], [0], [1], [0, 0, 1, 1], [], []>} : vector<8x256xbf16>, vector<256x128xbf16>, vector<8x128xf32> -> vector<8x128xf32>
    %12 = vector.broadcast %8 : vector<8x1xf32> to vector<8x128xf32>
    %13 = arith.mulf %11, %12 : vector<8x128xf32>
    %c0_6 = arith.constant 0 : index
    %c0_7 = arith.constant 0 : index
    %14 = vector.load %arg3[%c0_6, %c0_7] : memref<8x128xf32, #tpu.memory_space<vmem>>, vector<8x128xf32>
    tpu.vector_store %arg3[%c0_6, %c0_7], %13 {strides = array<i32>} : memref<8x128xf32, #tpu.memory_space<vmem>>, vector<8x128xf32>,
    return
  }
  func.func @transform_0(%arg0: i32) -> (i32, i32) {
    %c0_i32 = arith.constant 0 : i32
    %c0_i32_0 = arith.constant 0 : i32
    return %arg0, %c0_i32 : i32, i32
  }
  func.func @transform_1(%arg0: i32) -> (i32, i32) {
    %c0_i32 = arith.constant 0 : i32
    %c0_i32_0 = arith.constant 0 : i32
    %c0_i32_1 = arith.constant 0 : i32
    return %c0_i32, %c0_i32_0 : i32, i32
  }
  func.func @transform_2(%arg0: i32) -> (i32, i32) {
    %c0_i32 = arith.constant 0 : i32
    %c0_i32_0 = arith.constant 0 : i32
    return %arg0, %c0_i32 : i32, i32
  }
}

module attributes {stable_mosaic.version = 11 : i64} {
  func.func @_classifier_kernel(%arg0: i32, %arg1: memref<8x256xf32, #tpu.memory_space<vmem>>, %arg2: memref<256x128xbf16, #tpu.memory_space<vmem>>, %arg3: memref<8x128xf32, #tpu.memory_space<vmem>>) attributes {dimension_semantics = [#tpu.dimension_semantics<parallel>], iteration_bounds = array<i64: 1>, scalar_prefetch = 0 : i64, scratch_operands = 0 : i64, tpu.core_type = #tpu.core_type<tc>, window_params = [{transform_indices = @transform_0, window_bounds = array<i64: 8, 256>}, {pipeline_mode = #tpu.pipeline_mode<synchronous>, transform_indices = @transform_1, window_bounds = array<i64: 256, 128>}, {transform_indices = @transform_2, window_bounds = array<i64: 8, 128>}]} {
    %c0 = arith.constant 0 : index
    %c0_0 = arith.constant 0 : index
    %0 = vector.load %arg1[%c0, %c0_0] : memref<8x256xf32, #tpu.memory_space<vmem>>, vector<8x256xf32>
    %1 = arith.mulf %0, %0 : vector<8x256xf32>
    %cst = arith.constant dense<0.000000e+00> : vector<8xf32>
    %2 = vector.multi_reduction <add>, %1, %cst [1] : vector<8x256xf32> to vector<8xf32>
    %3 = vector.shape_cast %2 : vector<8xf32> to vector<8x1xf32>
    %cst_1 = arith.constant 1.000000e-24 : f32
    %4 = vector.broadcast %cst_1 : f32 to vector<8x1xf32>
    %5 = arith.maximumf %3, %4 : vector<8x1xf32>
    %6 = math.rsqrt %5 : vector<8x1xf32>
    %cst_2 = arith.constant 2.000000e+01 : f32
    %7 = vector.broadcast %cst_2 : f32 to vector<8x1xf32>
    %8 = arith.mulf %6, %7 : vector<8x1xf32>
    %9 = arith.truncf %0 : vector<8x256xf32> to vector<8x256xbf16>
    %c0_3 = arith.constant 0 : index
    %c0_4 = arith.constant 0 : index
    %10 = vector.load %arg2[%c0_3, %c0_4] : memref<256x128xbf16, #tpu.memory_space<vmem>>, vector<256x128xbf16>
    %cst_5 = arith.constant dense<0.000000e+00> : vector<8x128xf32>
    %11 = tpu.matmul %9, %10, %cst_5 {dimension_numbers = #tpu.dot_dimension_numbers<[1], [0], [0], [1], [0, 0, 1, 1], [], []>} : vector<8x256xbf16>, vector<256x128xbf16>, vector<8x128xf32> -> vector<8x128xf32>
    %12 = vector.broadcast %8 : vector<8x1xf32> to vector<8x128xf32>
    %13 = arith.mulf %11, %12 : vector<8x128xf32>
    %c0_6 = arith.constant 0 : index
    %c0_7 = arith.constant 0 : index
    %14 = vector.load %arg3[%c0_6, %c0_7] : memref<8x128xf32, #tpu.memory_space<vmem>>, vector<8x128xf32>
    tpu.vector_store %arg3[%c0_6, %c0_7], %13 {strides = array<i32>} : memref<8x128xf32, #tpu.memory_space<vmem>>, vector<8x128xf32>,
    return
  }
  func.func @transform_0(%arg0: i32) -> (i32, i32) {
    %c0_i32 = arith.constant 0 : i32
    %c0_i32_0 = arith.constant 0 : i32
    return %arg0, %c0_i32 : i32, i32
  }
  func.func @transform_1(%arg0: i32) -> (i32, i32) {
    %c0_i32 = arith.constant 0 : i32
    %c0_i32_0 = arith.constant 0 : i32
    %c0_i32_1 = arith.constant 0 : i32
    return %c0_i32, %c0_i32_0 : i32, i32
  }
  func.func @transform_2(%arg0: i32) -> (i32, i32) {
    %c0_i32 = arith.constant 0 : i32
    %c0_i32_0 = arith.constant 0 : i32
    return %arg0, %c0_i32 : i32, i32
  }
}

</mosaic_0001>

<bundles_post_ra>
// kernel: tpu_custom_call.1
= control target key start
LH: loop header
LB: loop body
LE: loop exit
PB: predicated region body
PF: predicated region fallthrough
CT: control target
= control target key end

     0   :  { %7 = vsyncpa [#allocation3], 0  ;;  %s431_s0 = inlined_call_operand.hbm [shape: f32[8,256], index: 0, kind: input, shape index: {}]   ;;  %s432_s1 = inlined_call_operand.hbm [shape: bf16[256,128], index: 1, kind: input, shape index: {}]   ;;  %s433_s2 = inlined_call_operand.hbm [shape: f32[8,128], index: 2, kind: output, shape index: {}]  }
   0x1   :  { %8 = vsyncpa [#allocation6], 0 }
   0x2   :  { %9 = vsyncpa [#allocation4], 0  ;;  %s15_s11 = sshll.u32 %s431_s0, 4  ;;  %s402_s12 = smov [#allocation2]   ;;  %s16_s11 = int_to_ptr.hbm [resolvable:$true] %s15_s11 }
   0x3   :  { %s17_s13 = sshll.u32 %s402_s12, 4  ;;  %s25_s16 = sshll.u32 %s432_s1, 4  ;;  %s18_s13 = int_to_ptr.vmem [resolvable:$true] %s17_s13  ;;  %s26_s16 = int_to_ptr.hbm [resolvable:$true] %s25_s16 }
   0x4   :  { %20 = dma.hbm_to_vmem [thread:$0]  %s16_s11, 256, %s18_s13, [#allocation3]  }
   0x5   :  { %s403_s17 = smov [#allocation5]   ;;  %s404_s19 = smov 64  }
   0x6   :  { %s27_s18 = sshll.u32 %s403_s17, 4  ;;  %s405_s20 = smov 4   ;;  %s28_s18 = int_to_ptr.vmem [resolvable:$true] %s27_s18 }
   0x7   :  { %33 = dma.hbm_to_vmem [thread:$0]  %s26_s16, 2048, %s28_s18, [#allocation6], %s404_s19, %s404_s19, %s405_s20  }
   0x8   :  { %396 = dma.done.wait [#allocation3], 256  }
   0x9   :  { %397 = vsyncadd [#allocation3], 4294967040 }
   0xa   :  { %398 = dma.done.wait [#allocation6], 2048  }
   0xb   :  { %399 = vsyncadd [#allocation6], 4294965248  ;;  %v308_v0 = vld [vmem:[#allocation5 + $0x38] sm:$0xff]  ;;  %v42_v2 = vld [vmem:[#allocation2] sm:$0xff]  ;;  %s406_s0 = smov [#allocation7]   ;;  %s226_s23 = sshll.u32 %s433_s2, 4  ;;  %s227_s23 = int_to_ptr.hbm [resolvable:$true] %s226_s23 }
   0xc   :  { %v316_v1 = vld [vmem:[#allocation5 + $0x78] sm:$0xff]  ;;  %191 = vmatpush.bf16.msra.mxu0 %v308_v0  ;;  %v307_v4 = vld [vmem:[#allocation5 + $0x30] sm:$0xff]  ;;  %v44_v6 = vmul.f32 %v42_v2, %v42_v2  ;;  %v306_v9 = vld [vmem:[#allocation5 + $0x28] sm:$0xff]  ;;  %v61_v21 = vpack.c.bf16 %v42_v2, %v42_v2  ;;  %s224_s1 = sshll.u32 %s406_s0, 4  ;;  %s225_s1 = int_to_ptr.vmem [resolvable:$true] %s224_s1 }
   0xd   :  { %v43_v3 = vld [vmem:[#allocation2 + $0x8] sm:$0xff]  ;;  %204 = vmatpush.bf16.msra.mxu1 %v316_v1  ;;  %v315_v5 = vld [vmem:[#allocation5 + $0x70] sm:$0xff]  ;;  %v314_v10 = vld [vmem:[#allocation5 + $0x68] sm:$0xff] }
   0xe   :  { %v45_v7 = vmul.f32 %v43_v3, %v43_v3  ;;  %v305_v11 = vld [vmem:[#allocation5 + $0x20] sm:$0xff]  ;;  %v304_v13 = vld [vmem:[#allocation5 + $0x18] sm:$0xff]  ;;  %v303_v15 = vld [vmem:[#allocation5 + $0x10] sm:$0xff]  ;;  %v62_v22 = vpack.c.bf16 %v43_v3, %v43_v3 }
   0xf   :  { %v313_v12 = vld [vmem:[#allocation5 + $0x60] sm:$0xff]  ;;  %v312_v14 = vld [vmem:[#allocation5 + $0x58] sm:$0xff]  ;;  %v311_v16 = vld [vmem:[#allocation5 + $0x50] sm:$0xff] }
  0x10   :  { %v46_v8 = vadd.f32 %v45_v7, %v44_v6  ;;  %192 = vmatpush.bf16.msra.mxu0 %v307_v4  ;;  %v302_v17 = vld [vmem:[#allocation5 + $0x8] sm:$0xff]  ;;  %v301_v19 = vld [vmem:[#allocation5] sm:$0xff] }
  0x11   :  { %205 = vmatpush.bf16.msra.mxu1 %v315_v5  ;;  %v310_v18 = vld [vmem:[#allocation5 + $0x48] sm:$0xff]  ;;  %v309_v20 = vld [vmem:[#allocation5 + $0x40] sm:$0xff] }
  0x12   :  { %47 = vadd.xlane.f32.xlu0 %v46_v8 }
  0x14   :  { %193 = vmatpush.bf16.msra.mxu0 %v306_v9 }
  0x15   :  { %206 = vmatpush.bf16.msra.mxu1 %v314_v10 }
  0x18   :  { %194 = vmatpush.bf16.msra.mxu0 %v305_v11 }
  0x19   :  { %207 = vmatpush.bf16.msra.mxu1 %v313_v12 }
  0x1c   :  { %195 = vmatpush.bf16.msra.mxu0 %v304_v13 }
  0x1d   :  { %208 = vmatpush.bf16.msra.mxu1 %v312_v14 }
  0x20   :  { %196 = vmatpush.bf16.msra.mxu0 %v303_v15 }
  0x21   :  { %209 = vmatpush.bf16.msra.mxu1 %v311_v16 }
  0x24   :  { %197 = vmatpush.bf16.msra.mxu0 %v302_v17 }
  0x25   :  { %210 = vmatpush.bf16.msra.mxu1 %v310_v18 }
  0x28   :  { %198 = vmatpush.bf16.msra.mxu0 %v301_v19 }
  0x29   :  { %211 = vmatpush.bf16.msra.mxu1 %v309_v20 }
  0x2b   :  { %199 = vmatmul.bf16.vlgmr.msra.gmra.mxu0 %v61_v21 }
  0x2c   :  { %212 = vmatmul.bf16.vlgmr.msra.gmra.mxu1 %v62_v22 }
  0x85   :  { %v48_v23 = vpop.xlane.xlu0 %47 }
  0x86   :  { %v49_v24 = vmax.f32 %v48_v23, 1e-24 }
  0x88   :  { %322 = vrsqrt.f32 %v49_v24  ;;  %vm56_vm0 = vweird.f32 %v49_v24 }
  0x8e   :  { %v323_v25 = vpop.eup %322 }
  0x8f   :  { %v51_v26 = vmul.f32 %v323_v25, %v49_v24  ;;  %vm57_vm1 = vweird.f32 %v323_v25 }
  0x90   :  { %vm58_vm2 = vmor %vm56_vm0, %vm57_vm1 }
  0x91   :  { %v52_v27 = vmul.f32 %v323_v25, %v51_v26 }
  0x93   :  { %v53_v28 = vmul.f32 0.5, %v52_v27 }
  0x95   :  { %v54_v29 = vsub.f32 1.5, %v53_v28 }
  0x97   :  { %v55_v30 = vmul.f32 %v323_v25, %v54_v29 }
  0x99   :  { %v59_v31 = vsel %vm58_vm2, %v323_v25, %v55_v30 }
  0x9a   :  { %v60_v34 = vmul.f32 20.0, %v59_v31 }
  0xa8   :  { %v200_v32 = vpop.f32.mrf.mxu0 }
  0xa9   :  { %v213_v33 = vpop.f32.mrf.mxu1 }
  0xaa   :  { %v214_v35 = vadd.f32 %v213_v33, %v200_v32 }
  0xac   :  { %v217_v36 = vmul.f32 %v214_v35, %v60_v34 }
  0xae   :  { %218 = vst [vmem:[#allocation7] sm:$0xff] %v217_v36 }
  0xaf   :  { %229 = dma.vmem_to_hbm [thread:$0]  %s225_s1, 128, %s227_s23, [#allocation4]  }
  0xb0   :  { %v202_v37 = vpop.f32.mrf.mxu0 }
  0xb1   :  { %v215_v38 = vpop.f32.mrf.mxu1 }
  0xb2   :  { %400 = dma.done.wait [#allocation4], 128  }
  0xb3   :  { %401 = vsyncadd [#allocation4], 4294967168 }
  0xb4   :  { %234 = vsyncpa [#allocation3], 1 }
  0xb5   :  { %235 = vsyncpa [#allocation6], 1 }
  0xb6   :  { %236 = vsyncpa [#allocation4], 1 }

// kernel: tpu_custom_call.1
= control target key start
LH: loop header
LB: loop body
LE: loop exit
PB: predicated region body
PF: predicated region fallthrough
CT: control target
= control target key end

     0   :  { %7 = vsyncpa [#allocation3], 0  ;;  %s431_s0 = inlined_call_operand.hbm [shape: f32[8,256], index: 0, kind: input, shape index: {}]   ;;  %s432_s1 = inlined_call_operand.hbm [shape: bf16[256,128], index: 1, kind: input, shape index: {}]   ;;  %s433_s2 = inlined_call_operand.hbm [shape: f32[8,128], index: 2, kind: output, shape index: {}]  }
   0x1   :  { %8 = vsyncpa [#allocation6], 0 }
   0x2   :  { %9 = vsyncpa [#allocation4], 0  ;;  %s15_s11 = sshll.u32 %s431_s0, 4  ;;  %s402_s12 = smov [#allocation2]   ;;  %s16_s11 = int_to_ptr.hbm [resolvable:$true] %s15_s11 }
   0x3   :  { %s17_s13 = sshll.u32 %s402_s12, 4  ;;  %s25_s16 = sshll.u32 %s432_s1, 4  ;;  %s18_s13 = int_to_ptr.vmem [resolvable:$true] %s17_s13  ;;  %s26_s16 = int_to_ptr.hbm [resolvable:$true] %s25_s16 }
   0x4   :  { %20 = dma.hbm_to_vmem [thread:$0]  %s16_s11, 256, %s18_s13, [#allocation3]  }
   0x5   :  { %s403_s17 = smov [#allocation5]   ;;  %s404_s19 = smov 64  }
   0x6   :  { %s27_s18 = sshll.u32 %s403_s17, 4  ;;  %s405_s20 = smov 4   ;;  %s28_s18 = int_to_ptr.vmem [resolvable:$true] %s27_s18 }
   0x7   :  { %33 = dma.hbm_to_vmem [thread:$0]  %s26_s16, 2048, %s28_s18, [#allocation6], %s404_s19, %s404_s19, %s405_s20  }
   0x8   :  { %396 = dma.done.wait [#allocation3], 256  }
   0x9   :  { %397 = vsyncadd [#allocation3], 4294967040 }
   0xa   :  { %398 = dma.done.wait [#allocation6], 2048  }
   0xb   :  { %399 = vsyncadd [#allocation6], 4294965248  ;;  %v308_v0 = vld [vmem:[#allocation5 + $0x38] sm:$0xff]  ;;  %v42_v2 = vld [vmem:[#allocation2] sm:$0xff]  ;;  %s406_s0 = smov [#allocation7]   ;;  %s226_s23 = sshll.u32 %s433_s2, 4  ;;  %s227_s23 = int_to_ptr.hbm [resolvable:$true] %s226_s23 }
   0xc   :  { %v316_v1 = vld [vmem:[#allocation5 + $0x78] sm:$0xff]  ;;  %191 = vmatpush.bf16.msra.mxu0 %v308_v0  ;;  %v307_v4 = vld [vmem:[#allocation5 + $0x30] sm:$0xff]  ;;  %v44_v6 = vmul.f32 %v42_v2, %v42_v2  ;;  %v306_v9 = vld [vmem:[#allocation5 + $0x28] sm:$0xff]  ;;  %v61_v21 = vpack.c.bf16 %v42_v2, %v42_v2  ;;  %s224_s1 = sshll.u32 %s406_s0, 4  ;;  %s225_s1 = int_to_ptr.vmem [resolvable:$true] %s224_s1 }
   0xd   :  { %v43_v3 = vld [vmem:[#allocation2 + $0x8] sm:$0xff]  ;;  %204 = vmatpush.bf16.msra.mxu1 %v316_v1  ;;  %v315_v5 = vld [vmem:[#allocation5 + $0x70] sm:$0xff]  ;;  %v314_v10 = vld [vmem:[#allocation5 + $0x68] sm:$0xff] }
   0xe   :  { %v45_v7 = vmul.f32 %v43_v3, %v43_v3  ;;  %v305_v11 = vld [vmem:[#allocation5 + $0x20] sm:$0xff]  ;;  %v304_v13 = vld [vmem:[#allocation5 + $0x18] sm:$0xff]  ;;  %v303_v15 = vld [vmem:[#allocation5 + $0x10] sm:$0xff]  ;;  %v62_v22 = vpack.c.bf16 %v43_v3, %v43_v3 }
   0xf   :  { %v313_v12 = vld [vmem:[#allocation5 + $0x60] sm:$0xff]  ;;  %v312_v14 = vld [vmem:[#allocation5 + $0x58] sm:$0xff]  ;;  %v311_v16 = vld [vmem:[#allocation5 + $0x50] sm:$0xff] }
  0x10   :  { %v46_v8 = vadd.f32 %v45_v7, %v44_v6  ;;  %192 = vmatpush.bf16.msra.mxu0 %v307_v4  ;;  %v302_v17 = vld [vmem:[#allocation5 + $0x8] sm:$0xff]  ;;  %v301_v19 = vld [vmem:[#allocation5] sm:$0xff] }
  0x11   :  { %205 = vmatpush.bf16.msra.mxu1 %v315_v5  ;;  %v310_v18 = vld [vmem:[#allocation5 + $0x48] sm:$0xff]  ;;  %v309_v20 = vld [vmem:[#allocation5 + $0x40] sm:$0xff] }
  0x12   :  { %47 = vadd.xlane.f32.xlu0 %v46_v8 }
  0x14   :  { %193 = vmatpush.bf16.msra.mxu0 %v306_v9 }
  0x15   :  { %206 = vmatpush.bf16.msra.mxu1 %v314_v10 }
  0x18   :  { %194 = vmatpush.bf16.msra.mxu0 %v305_v11 }
  0x19   :  { %207 = vmatpush.bf16.msra.mxu1 %v313_v12 }
  0x1c   :  { %195 = vmatpush.bf16.msra.mxu0 %v304_v13 }
  0x1d   :  { %208 = vmatpush.bf16.msra.mxu1 %v312_v14 }
  0x20   :  { %196 = vmatpush.bf16.msra.mxu0 %v303_v15 }
  0x21   :  { %209 = vmatpush.bf16.msra.mxu1 %v311_v16 }
  0x24   :  { %197 = vmatpush.bf16.msra.mxu0 %v302_v17 }
  0x25   :  { %210 = vmatpush.bf16.msra.mxu1 %v310_v18 }
  0x28   :  { %198 = vmatpush.bf16.msra.mxu0 %v301_v19 }
  0x29   :  { %211 = vmatpush.bf16.msra.mxu1 %v309_v20 }
  0x2b   :  { %199 = vmatmul.bf16.vlgmr.msra.gmra.mxu0 %v61_v21 }
  0x2c   :  { %212 = vmatmul.bf16.vlgmr.msra.gmra.mxu1 %v62_v22 }
  0x85   :  { %v48_v23 = vpop.xlane.xlu0 %47 }
  0x86   :  { %v49_v24 = vmax.f32 %v48_v23, 1e-24 }
  0x88   :  { %322 = vrsqrt.f32 %v49_v24  ;;  %vm56_vm0 = vweird.f32 %v49_v24 }
  0x8e   :  { %v323_v25 = vpop.eup %322 }
  0x8f   :  { %v51_v26 = vmul.f32 %v323_v25, %v49_v24  ;;  %vm57_vm1 = vweird.f32 %v323_v25 }
  0x90   :  { %vm58_vm2 = vmor %vm56_vm0, %vm57_vm1 }
  0x91   :  { %v52_v27 = vmul.f32 %v323_v25, %v51_v26 }
  0x93   :  { %v53_v28 = vmul.f32 0.5, %v52_v27 }
  0x95   :  { %v54_v29 = vsub.f32 1.5, %v53_v28 }
  0x97   :  { %v55_v30 = vmul.f32 %v323_v25, %v54_v29 }
  0x99   :  { %v59_v31 = vsel %vm58_vm2, %v323_v25, %v55_v30 }
  0x9a   :  { %v60_v34 = vmul.f32 20.0, %v59_v31 }
  0xa8   :  { %v200_v32 = vpop.f32.mrf.mxu0 }
  0xa9   :  { %v213_v33 = vpop.f32.mrf.mxu1 }
  0xaa   :  { %v214_v35 = vadd.f32 %v213_v33, %v200_v32 }
  0xac   :  { %v217_v36 = vmul.f32 %v214_v35, %v60_v34 }
  0xae   :  { %218 = vst [vmem:[#allocation7] sm:$0xff] %v217_v36 }
  0xaf   :  { %229 = dma.vmem_to_hbm [thread:$0]  %s225_s1, 128, %s227_s23, [#allocation4]  }
  0xb0   :  { %v202_v37 = vpop.f32.mrf.mxu0 }
  0xb1   :  { %v215_v38 = vpop.f32.mrf.mxu1 }
  0xb2   :  { %400 = dma.done.wait [#allocation4], 128  }
  0xb3   :  { %401 = vsyncadd [#allocation4], 4294967168 }
  0xb4   :  { %234 = vsyncpa [#allocation3], 1 }
  0xb5   :  { %235 = vsyncpa [#allocation6], 1 }
  0xb6   :  { %236 = vsyncpa [#allocation4], 1 }

</bundles_post_ra>
